<compile_context>
chip_gen: v7x
topology: tpu7x:2x2x1
jax: 0.10.0
libtpu: 0.0.40
codegen_flags: <defaults>
</compile_context>

<pallas_src>
import functools

import jax
import jax.numpy as jnp
from jax.experimental import pallas as pl
from jax.experimental.pallas import tpu as pltpu


def _round_up(x, m):
    return ((x + m - 1) // m) * m


def _cdiv(a, b):
    return (a + b - 1) // b


_MAX_BATCH_TILE = 4096  # rows per grid step (multiple of 16); VMEM ~16 MiB here.


def _actor_kernel(obs_ref, w1_ref, w2_ref, w3_ref, b_ref, out_ref, *,
                  max_action, hidden, action_dim):
    # obs_ref: (TB, obs_dim) f32; w1: (obs_dim, H) bf16; w2: (H, H) bf16;
    # w3: (H, action_dim) bf16; b_ref: (3, max(H, action_dim)) f32 (packed biases).
    # Cast obs to bf16 in-kernel (VPU has slack; avoids a separate XLA cast pass).
    x = obs_ref[...].astype(jnp.bfloat16)

    h1 = jnp.dot(x, w1_ref[...], preferred_element_type=jnp.float32)
    h1 = jnp.maximum(h1 + b_ref[0:1, :hidden], 0.0)              # f32 bias + ReLU

    h2 = jnp.dot(h1.astype(jnp.bfloat16), w2_ref[...],
                 preferred_element_type=jnp.float32)
    h2 = jnp.maximum(h2 + b_ref[1:2, :hidden], 0.0)

    h3 = jnp.dot(h2.astype(jnp.bfloat16), w3_ref[...],
                 preferred_element_type=jnp.float32)
    h3 = h3 + b_ref[2:3, :action_dim]

    out_ref[...] = (jnp.tanh(h3) * max_action).astype(out_ref.dtype)


def prepare_actor_params(params):
    """One-time conversion of the f32 Linear params into kernel operands.

    Returns (w1_bf16, w2_bf16, w3_bf16, packed_bias_f32).  Call once and reuse
    across forward passes (params are static across an RL acting loop), so the
    per-call wrapper cost is just the pallas_call itself.
    """
    w1, b1, w2, b2, w3, b3 = params
    hidden = w1.shape[1]
    action_dim = w3.shape[1]
    bw = max(hidden, action_dim)
    bcat = jnp.zeros((3, bw), jnp.float32)
    bcat = bcat.at[0, :hidden].set(b1.astype(jnp.float32))
    bcat = bcat.at[1, :hidden].set(b2.astype(jnp.float32))
    bcat = bcat.at[2, :action_dim].set(b3.astype(jnp.float32))
    return (w1.astype(jnp.bfloat16),
            w2.astype(jnp.bfloat16),
            w3.astype(jnp.bfloat16),
            bcat)


def actor_forward(obs, prepared_params, max_action, *, batch_tile=None):
    """Run the Actor MLP. obs: (B, obs_dim) float32 -> (B, action_dim) float32."""
    w1b, w2b, w3b, bcat = prepared_params
    B, obs_dim = obs.shape
    hidden = w1b.shape[1]
    action_dim = w3b.shape[1]
    bw = bcat.shape[1]

    if batch_tile is None:
        if B <= 16:
            batch_tile = 16
        else:
            # At least 2 grid steps (so "parallel" can shard across the two
            # TensorCores on v7x), capped so VMEM stays bounded for huge B.
            batch_tile = min(_MAX_BATCH_TILE, _round_up(_cdiv(B, 2), 16))
    batch_tile = max(16, _round_up(int(batch_tile), 16))

    grid_b = _cdiv(B, batch_tile)

    kernel = functools.partial(_actor_kernel, max_action=float(max_action),
                               hidden=hidden, action_dim=action_dim)

    # No padding: the last block may overhang the array.  Overhang rows read
    # undefined data but rows are independent; out-of-bounds writes are
    # discarded by Pallas, so only valid rows land in the (B, action_dim) out.
    return pl.pallas_call(
        kernel,
        out_shape=jax.ShapeDtypeStruct((B, action_dim), obs.dtype),
        grid_spec=pltpu.PrefetchScalarGridSpec(
            num_scalar_prefetch=0,
            grid=(grid_b,),
            in_specs=[
                pl.BlockSpec((batch_tile, obs_dim), lambda i: (i, 0)),  # obs tile (f32)
                pl.BlockSpec((obs_dim, hidden), lambda i: (0, 0)),      # W1 (full)
                pl.BlockSpec((hidden, hidden), lambda i: (0, 0)),       # W2 (full)
                pl.BlockSpec((hidden, action_dim), lambda i: (0, 0)),   # W3 (full)
                pl.BlockSpec((3, bw), lambda i: (0, 0)),                # packed biases
            ],
            out_specs=pl.BlockSpec((batch_tile, action_dim), lambda i: (i, 0)),
        ),
        compiler_params=pltpu.CompilerParams(
            dimension_semantics=("parallel",),
            vmem_limit_bytes=32 * 1024 * 1024),
    )(obs, w1b, w2b, w3b, bcat)


def init_actor_params(key, obs_dim, action_dim, hidden=64):
    """Deterministic init mimicking PyTorch nn.Linear default (U[-1/sqrt(fan_in), +])."""
    ks = jax.random.split(key, 6)

    def linear(kw, kb, fan_in, fan_out):
        bound = 1.0 / jnp.sqrt(fan_in)
        w = jax.random.uniform(kw, (fan_in, fan_out), jnp.float32, -bound, bound)
        b = jax.random.uniform(kb, (fan_out,), jnp.float32, -bound, bound)
        return w, b

    w1, b1 = linear(ks[0], ks[1], obs_dim, hidden)
    w2, b2 = linear(ks[2], ks[3], hidden, hidden)
    w3, b3 = linear(ks[4], ks[5], hidden, action_dim)
    return (w1, b1, w2, b2, w3, b3)


def _reference_bf16(obs, params, max_action):
    """Pure-JAX reference mirroring the kernel's bf16-input / f32-accumulate math."""
    w1, b1, w2, b2, w3, b3 = params
    xb = obs.astype(jnp.bfloat16)
    w1b, w2b, w3b = (w.astype(jnp.bfloat16) for w in (w1, w2, w3))
    h1 = jnp.maximum(jnp.dot(xb, w1b, preferred_element_type=jnp.float32) + b1, 0.0)
    h2 = jnp.maximum(jnp.dot(h1.astype(jnp.bfloat16), w2b,
                             preferred_element_type=jnp.float32) + b2, 0.0)
    h3 = jnp.dot(h2.astype(jnp.bfloat16), w3b,
                 preferred_element_type=jnp.float32) + b3
    return jnp.tanh(h3) * max_action


def _reference_f32(obs, params, max_action):
    """Full-precision reference (same math as the PyTorch module)."""
    w1, b1, w2, b2, w3, b3 = params
    h1 = jnp.maximum(obs @ w1 + b1, 0.0)
    h2 = jnp.maximum(h1 @ w2 + b2, 0.0)
    return jnp.tanh(h2 @ w3 + b3) * max_action


if __name__ == "__main__":
    key = jax.random.PRNGKey(0)
    k_obs, k_obs2, k_params = jax.random.split(key, 3)

    obs_dim, action_dim, max_action = 16, 4, 2.0
    params = init_actor_params(k_params, obs_dim, action_dim)
    prepared = prepare_actor_params(params)   # one-time weight cast / bias pack

    # Small-batch check (B=8 < tile=16: single overhanging block).
    obs_small = jax.random.normal(k_obs, (8, obs_dim), dtype=jnp.float32)
    out_small = jax.block_until_ready(actor_forward(obs_small, prepared, max_action))
    assert out_small.shape == (8, action_dim)
    assert jnp.allclose(out_small, _reference_bf16(obs_small, params, max_action),
                        atol=1e-4, rtol=1e-4)

    # Ragged, multi-tile check (600 rows -> tile=304, grid=2, last block overhangs).
    obs_big = jax.random.normal(k_obs2, (600, obs_dim), dtype=jnp.float32)
    out_big = jax.block_until_ready(actor_forward(obs_big, prepared, max_action))
    assert out_big.shape == (600, action_dim)
    assert jnp.allclose(out_big, _reference_bf16(obs_big, params, max_action),
                        atol=1e-4, rtol=1e-4)
    # Coarse check against the pure-f32 PyTorch-equivalent math (bf16 rounding).
    assert jnp.allclose(out_big, _reference_f32(obs_big, params, max_action),
                        atol=1e-1)

    print("KERNEL_OK")
</pallas_src>

<mosaic_0001>
module attributes {stable_mosaic.version = 11 : i64} {
  func.func @_actor_kernel(%arg0: i32, %arg1: memref<16x16xf32, #tpu.memory_space<vmem>>, %arg2: memref<16x64xbf16, #tpu.memory_space<vmem>>, %arg3: memref<64x64xbf16, #tpu.memory_space<vmem>>, %arg4: memref<64x4xbf16, #tpu.memory_space<vmem>>, %arg5: memref<3x64xf32, #tpu.memory_space<vmem>>, %arg6: memref<16x4xf32, #tpu.memory_space<vmem>>) attributes {dimension_semantics = [#tpu.dimension_semantics<parallel>], iteration_bounds = array<i64: 1>, scalar_prefetch = 0 : i64, scratch_operands = 0 : i64, tpu.core_type = #tpu.core_type<tc>, window_params = [{transform_indices = @transform_0, window_bounds = array<i64: 16, 16>}, {pipeline_mode = #tpu.pipeline_mode<synchronous>, transform_indices = @transform_1, window_bounds = array<i64: 16, 64>}, {pipeline_mode = #tpu.pipeline_mode<synchronous>, transform_indices = @transform_2, window_bounds = array<i64: 64, 64>}, {pipeline_mode = #tpu.pipeline_mode<synchronous>, transform_indices = @transform_3, window_bounds = array<i64: 64, 4>}, {pipeline_mode = #tpu.pipeline_mode<synchronous>, transform_indices = @transform_4, window_bounds = array<i64: 3, 64>}, {transform_indices = @transform_5, window_bounds = array<i64: 16, 4>}]} {
    %c0 = arith.constant 0 : index
    %c0_0 = arith.constant 0 : index
    %0 = vector.load %arg1[%c0, %c0_0] : memref<16x16xf32, #tpu.memory_space<vmem>>, vector<16x16xf32>
    %1 = arith.truncf %0 : vector<16x16xf32> to vector<16x16xbf16>
    %c0_1 = arith.constant 0 : index
    %c0_2 = arith.constant 0 : index
    %2 = vector.load %arg2[%c0_1, %c0_2] : memref<16x64xbf16, #tpu.memory_space<vmem>>, vector<16x64xbf16>
    %cst = arith.constant dense<0.000000e+00> : vector<16x64xf32>
    %3 = tpu.matmul %1, %2, %cst {dimension_numbers = #tpu.dot_dimension_numbers<[1], [0], [0], [1], [0, 0, 1, 1], [], []>} : vector<16x16xbf16>, vector<16x64xbf16>, vector<16x64xf32> -> vector<16x64xf32>
    %c0_3 = arith.constant 0 : index
    %c0_4 = arith.constant 0 : index
    %4 = vector.load %arg5[%c0_3, %c0_4] : memref<3x64xf32, #tpu.memory_space<vmem>>, vector<1x64xf32>
    %5 = vector.broadcast %4 : vector<1x64xf32> to vector<16x64xf32>
    %6 = arith.addf %3, %5 : vector<16x64xf32>
    %cst_5 = arith.constant 0.000000e+00 : f32
    %7 = vector.broadcast %cst_5 : f32 to vector<16x64xf32>
    %8 = arith.maximumf %6, %7 : vector<16x64xf32>
    %9 = arith.truncf %8 : vector<16x64xf32> to vector<16x64xbf16>
    %c0_6 = arith.constant 0 : index
    %c0_7 = arith.constant 0 : index
    %10 = vector.load %arg3[%c0_6, %c0_7] : memref<64x64xbf16, #tpu.memory_space<vmem>>, vector<64x64xbf16>
    %cst_8 = arith.constant dense<0.000000e+00> : vector<16x64xf32>
    %11 = tpu.matmul %9, %10, %cst_8 {dimension_numbers = #tpu.dot_dimension_numbers<[1], [0], [0], [1], [0, 0, 1, 1], [], []>} : vector<16x64xbf16>, vector<64x64xbf16>, vector<16x64xf32> -> vector<16x64xf32>
    %c1 = arith.constant 1 : index
    %c0_9 = arith.constant 0 : index
    %12 = vector.load %arg5[%c1, %c0_9] : memref<3x64xf32, #tpu.memory_space<vmem>>, vector<1x64xf32>
    %13 = vector.broadcast %12 : vector<1x64xf32> to vector<16x64xf32>
    %14 = arith.addf %11, %13 : vector<16x64xf32>
    %cst_10 = arith.constant 0.000000e+00 : f32
    %15 = vector.broadcast %cst_10 : f32 to vector<16x64xf32>
    %16 = arith.maximumf %14, %15 : vector<16x64xf32>
    %17 = arith.truncf %16 : vector<16x64xf32> to vector<16x64xbf16>
    %c0_11 = arith.constant 0 : index
    %c0_12 = arith.constant 0 : index
    %18 = vector.load %arg4[%c0_11, %c0_12] : memref<64x4xbf16, #tpu.memory_space<vmem>>, vector<64x4xbf16>
    %cst_13 = arith.constant dense<0.000000e+00> : vector<16x4xf32>
    %19 = tpu.matmul %17, %18, %cst_13 {dimension_numbers = #tpu.dot_dimension_numbers<[1], [0], [0], [1], [0, 0, 1, 1], [], []>} : vector<16x64xbf16>, vector<64x4xbf16>, vector<16x4xf32> -> vector<16x4xf32>
    %c2 = arith.constant 2 : index
    %c0_14 = arith.constant 0 : index
    %20 = vector.load %arg5[%c2, %c0_14] : memref<3x64xf32, #tpu.memory_space<vmem>>, vector<1x4xf32>
    %21 = vector.broadcast %20 : vector<1x4xf32> to vector<16x4xf32>
    %22 = arith.addf %19, %21 : vector<16x4xf32>
    %23 = math.tanh %22 : vector<16x4xf32>
    %cst_15 = arith.constant 2.000000e+00 : f32
    %24 = vector.broadcast %cst_15 : f32 to vector<16x4xf32>
    %25 = arith.mulf %23, %24 : vector<16x4xf32>
    %c0_16 = arith.constant 0 : index
    %c0_17 = arith.constant 0 : index
    %26 = vector.load %arg6[%c0_16, %c0_17] : memref<16x4xf32, #tpu.memory_space<vmem>>, vector<16x4xf32>
    tpu.vector_store %arg6[%c0_16, %c0_17], %25 {strides = array<i32>} : memref<16x4xf32, #tpu.memory_space<vmem>>, vector<16x4xf32>,
    return
  }
  func.func @transform_0(%arg0: i32) -> (i32, i32) {
    %c0_i32 = arith.constant 0 : i32
    %c0_i32_0 = arith.constant 0 : i32
    return %arg0, %c0_i32 : i32, i32
  }
  func.func @transform_1(%arg0: i32) -> (i32, i32) {
    %c0_i32 = arith.constant 0 : i32
    %c0_i32_0 = arith.constant 0 : i32
    %c0_i32_1 = arith.constant 0 : i32
    return %c0_i32, %c0_i32_0 : i32, i32
  }
  func.func @transform_2(%arg0: i32) -> (i32, i32) {
    %c0_i32 = arith.constant 0 : i32
    %c0_i32_0 = arith.constant 0 : i32
    %c0_i32_1 = arith.constant 0 : i32
    return %c0_i32, %c0_i32_0 : i32, i32
  }
  func.func @transform_3(%arg0: i32) -> (i32, i32) {
    %c0_i32 = arith.constant 0 : i32
    %c0_i32_0 = arith.constant 0 : i32
    %c0_i32_1 = arith.constant 0 : i32
    return %c0_i32, %c0_i32_0 : i32, i32
  }
  func.func @transform_4(%arg0: i32) -> (i32, i32) {
    %c0_i32 = arith.constant 0 : i32
    %c0_i32_0 = arith.constant 0 : i32
    %c0_i32_1 = arith.constant 0 : i32
    return %c0_i32, %c0_i32_0 : i32, i32
  }
  func.func @transform_5(%arg0: i32) -> (i32, i32) {
    %c0_i32 = arith.constant 0 : i32
    %c0_i32_0 = arith.constant 0 : i32
    return %arg0, %c0_i32 : i32, i32
  }
}

</mosaic_0001>

<bundles_post_ra>
// kernel: tpu_custom_call.1
= control target key start
LH: loop header
LB: loop body
LE: loop exit
PB: predicated region body
PF: predicated region fallthrough
CT: control target
= control target key end

     0   :  { %10 = vsyncpa [#allocation3], 0  ;;  %s412_s18 = smov [#allocation2]   ;;  %s506_s0 = inlined_call_operand.vmem [shape: f32[8,16], index: 0, kind: input, shape index: {}]   ;;  %s507_s1 = inlined_call_operand.hbm [shape: bf16[16,64], index: 1, kind: input, shape index: {}]   ;;  %s508_s2 = inlined_call_operand.vmem [shape: bf16[64,64], index: 2, kind: input, shape index: {}]   ;;  %s509_s3 = inlined_call_operand.vmem [shape: bf16[64,4], index: 3, kind: input, shape index: {}]   ;;  %s510_s4 = inlined_call_operand.vmem [shape: f32[3,64], index: 4, kind: input, shape index: {}]   ;;  %s511_s5 = inlined_call_operand.vmem [shape: f32[8,4], index: 5, kind: output, shape index: {}]  }
   0x1   :  { %s18_s19 = sshll.u32 %s412_s18, 4  ;;  %s388_s22 = scalar_lea.hbm %s507_s1, 128  ;;  %s19_s19 = int_to_ptr.vmem [resolvable:$true] %s18_s19 }
   0x2   :  { %p389_p0 = scmp.ne.s32.totalorder %s507_s1, %s388_s22  ;;  %p392_p1 = scmp.lt.u32.totalorder %s388_s22, %s507_s1 }
   0x4   :  { %p394_p2 = pnand %p392_p1, %p389_p0 }
   0x6   :  { %397 = shalt.err (!%p394_p2)
}
   0x7   :  { %s398_s27 = scalar_lea.vmem %s19_s19, 128  ;;  %p403_p4 = scmp.lt.s32.totalorder %s19_s19, %s19_s19 }
   0x8   :  { %p399_p3 = scmp.ne.s32.totalorder %s19_s19, %s398_s27  ;;  %p404_p5 = scmp.lt.s32.totalorder %s398_s27, %s398_s27 }
   0xa   :  { %p405_p6 = por %p404_p5, %p403_p4 }
   0xc   :  { %p406_p7 = pnand %p405_p6, %p399_p3 }
   0xe   :  { %409 = shalt.err (!%p406_p7)
}
   0xf   :  { %s413_s28 = smov 64   ;;  %s414_s29 = smov 4  }
  0x10   :  { %24 = dma.hbm_to_vmem [thread:$0]  %s507_s1, 128, %s19_s19, [#allocation3], %s413_s28, %s413_s28, %s414_s29  }
  0x11   :  { %410 = dma.done.wait [#allocation3], 128  }
  0x12   :  { %411 = vsyncadd [#allocation3], 4294967168  ;;  %v415_v0 = vmov 0.0   ;;  %vm416_vm0 = vmmov 0   ;;  %v375_v1 = vld [vmem:[#allocation2] sm:$0xff]   ;;  %v36_v3 = vld [vmem:[%s506_s0 + $0x8] sm:$0xff] }
  0x13   :  { %340 = vmatprep.subr.bf16.mxu0 %v415_v0  ;;  %342 = vmatprep.mubr.msk.bf16.mxu0 %vm416_vm0, %v415_v0  ;;  %v35_v2 = vld [vmem:[%s506_s0] sm:$0xff]  ;;  %vm51_vm1 = vcmask 130048   ;;  %v377_v6 = vld [vmem:[%s508_s2 + $0x8] sm:$0xff]   ;;  %v378_v7 = vld [vmem:[%s508_s2 + $0x10] sm:$0xff]   ;;  %vm136_vm2 = vcmask 523264   ;;  %vm269_vm3 = vcmask 31744  }
  0x14   :  { %346 = vmatprep.subr.bf16.mxu1 %v415_v0  ;;  %354 = vmatprep.mubr.msk.bf16.mxu1 %vm416_vm0, %v415_v0  ;;  %v37_v4 = vpack.c.bf16 %v36_v3, %v35_v2  ;;  %v376_v5 = vld [vmem:[%s508_s2] sm:$0xff]   ;;  %v379_v8 = vld [vmem:[%s508_s2 + $0x18] sm:$0xff]   ;;  %v381_v10 = vld [vmem:[%s509_s3 + $0x8] sm:$0xff]  }
  0x15   :  { %341 = vmatpush3.bf16.msra.mxu0 %v375_v1  ;;  %347 = vmatpush3.bf16.msra.mxu1 %v376_v5  ;;  %v380_v9 = vld [vmem:[%s509_s3] sm:$0xff]   ;;  %v382_v21 = vld [vmem:[%s509_s3 + $0x10] sm:$0xff]   ;;  %v383_v22 = vld [vmem:[%s509_s3 + $0x18] sm:$0xff]  }
  0x16   :  { %358 = vmatprep.subr.bf16.mxu0 %v415_v0  ;;  %348 = vmatprep.subr.bf16.mxu1 %v415_v0  ;;  %v313_v11 = vld [vmem:[%s510_s4] ss:$0 sm:$0xff]  ;;  %v316_v23 = vld [vmem:[%s510_s4 + $0x1] ss:$0 sm:$0xff]  ;;  %v322_v33 = vld [vmem:[%s510_s4 + $0x2] ss:$0 sm:$0xff] }
  0x18   :  { %343 = vmatmul.mubr.msk.bf16.vlgmr.msra.gmra.mrb[0].mxu0 %vm51_vm1, %v37_v4 }
  0x19   :  { %366 = vmatprep.mubr.msk.bf16.mxu0 %vm416_vm0, %v415_v0  ;;  %349 = vmatpush3.bf16.msra.mxu1 %v377_v6 }
  0x1a   :  { %350 = vmatprep.subr.bf16.mxu1 %v415_v0  ;;  %359 = vmatpush3.bf16.msra.mxu0 %v380_v9 }
  0x1b   :  { %360 = vmatprep.subr.bf16.mxu0 %v415_v0 }
  0x1d   :  { %351 = vmatpush3.bf16.msra.mxu1 %v378_v7 }
  0x1e   :  { %352 = vmatprep.subr.bf16.mxu1 %v415_v0  ;;  %361 = vmatpush3.bf16.msra.mxu0 %v381_v10 }
  0x1f   :  { %362 = vmatprep.subr.bf16.mxu0 %v415_v0 }
  0x21   :  { %353 = vmatpush3.bf16.msra.mxu1 %v379_v8 }
  0x22   :  { %363 = vmatpush3.bf16.msra.mxu0 %v382_v21 }
  0x23   :  { %364 = vmatprep.subr.bf16.mxu0 %v415_v0 }
  0x26   :  { %365 = vmatpush3.bf16.msra.mxu0 %v383_v22 }
  0xeb   :  { %v89_v12 = vpop.f32.mrb[0].mxu0 }
  0xec   :  { %v90_v13 = vadd.f32 %v313_v11, %v89_v12  ;;  %v344_v14 = vpop.f32.mrb[1].mxu0 }
  0xed   :  { %v92_v15 = vpop.f32.mrb[2].mxu0 }
  0xee   :  { %v93_v16 = vadd.f32 %v313_v11, %v92_v15  ;;  %v345_v17 = vpop.f32.mrb[3].mxu0  ;;  %v96_v18 = vmax.f32 %v90_v13, 0.0 }
  0xf0   :  { %v97_v19 = vmax.f32 %v93_v16, 0.0 }
  0xf2   :  { %v98_v20 = vpack.c.bf16 %v97_v19, %v96_v18 }
  0xf4   :  { %355 = vmatmul.mubr.msk.bf16.vlgmr.msra.gmra.mrb[0].mxu1 %vm136_vm2, %v98_v20 }
 0x1c7   :  { %v174_v24 = vpop.f32.mrb[0].mxu1 }
 0x1c8   :  { %v175_v25 = vadd.f32 %v316_v23, %v174_v24  ;;  %v356_v26 = vpop.f32.mrb[1].mxu1 }
 0x1c9   :  { %v177_v27 = vpop.f32.mrb[2].mxu1 }
 0x1ca   :  { %v178_v28 = vadd.f32 %v316_v23, %v177_v27  ;;  %v357_v29 = vpop.f32.mrb[3].mxu1  ;;  %v181_v30 = vmax.f32 %v175_v25, 0.0 }
 0x1cc   :  { %v182_v31 = vmax.f32 %v178_v28, 0.0 }
 0x1ce   :  { %v183_v32 = vpack.c.bf16 %v182_v31, %v181_v30 }
 0x1d0   :  { %367 = vmatmul.mubr.msk.bf16.vlgmr.msra.gmra.mrb[4].mxu0 %vm136_vm2, %v183_v32 }
 0x2a3   :  { %v258_v34 = vpop.f32.mrb[4].mxu0 }
 0x2a4   :  { %v259_v35 = vadd.f32 %v322_v33, %v258_v34  ;;  %v368_v36 = vpop.f32.mrb[5].mxu0 }
 0x2a5   :  { %v261_v37 = vpop.f32.mrb[6].mxu0 }
 0x2a6   :  { %384 = vtanh.f32 %v259_v35  ;;  %v262_v38 = vadd.f32 %v322_v33, %v261_v37  ;;  %v369_v39 = vpop.f32.mrb[7].mxu0 }
 0x2a8   :  { %386 = vtanh.f32 %v262_v38 }
 0x2b0   :  { %v385_v40 = vpop.eup %384 }
 0x2b1   :  { %v267_v41 = vmul.f32 2.0, %v385_v40 }
 0x2b2   :  { %v387_v42 = vpop.eup %386 }
 0x2b3   :  { %270 = vst.msk [vmem:[#allocation4] sm:$0xff] %vm269_vm3, %v267_v41 }
 0x2ba   :  { %v301_v43 = vld [vmem:[#allocation4] sm:$0xff] }
 0x2bb   :  { %302 = vst [vmem:[%s511_s5] sm:$0xff] %v301_v43 }
 0x2bc   :  { %308 = vsyncpa [#allocation3], 1 }

</bundles_post_ra>
